<compile_context>
chip_gen: v6e
topology: v6e:2x2x1
jax: 0.10.0
libtpu: 0.0.40
codegen_flags: <defaults>
</compile_context>

<pallas_src>
import jax
import jax.numpy as jnp
from jax import lax
from jax.experimental import pallas as pl
from jax.experimental.pallas import tpu as pltpu


# ----------------------------------------------------------------------------
# VMEM / tile budgeting
# ----------------------------------------------------------------------------
def _vmem_budget():
    """(per-tile byte target, vmem_limit_bytes), sized per TPU generation.

    Pipeline working set ~= 4 * tile (double-buffered input + output) + masks,
    so keep 5 * tile <= vmem_limit for headroom.
      v5e/v6e (128 MiB physical VMEM): limit 64 MiB, 8 MiB tiles.
      v7x     ( 64 MiB physical VMEM): limit 48 MiB, 8 MiB tiles.
    """
    try:
        phys = int(pltpu.get_tpu_info().vmem_capacity_bytes)
    except Exception:  # conservative (v7x-sized) fallback if query unavailable
        phys = 64 * 1024 * 1024
    vmem_limit = min(3 * phys // 4, 64 * 1024 * 1024)
    tile = min(8 * 1024 * 1024, max(1 * 1024 * 1024, vmem_limit // 5))
    return tile, vmem_limit


def _sublane_unit(dtype):
    """Native packed sublane tile: 8 rows for 32-bit, 16 for bf16, 32 for int8."""
    return 8 * max(1, 4 // jnp.dtype(dtype).itemsize)


def _pick_block(dim, unit, max_elems):
    """Largest block that divides `dim`, is a multiple of `unit` (or the full
    extent, which is always legal), and is <= max_elems when possible."""
    if dim <= max_elems:
        return dim
    if dim % unit == 0:
        q = dim // unit
        for d in range(min(q, max(1, max_elems // unit)), 0, -1):
            if q % d == 0:
                return unit * d
    return dim  # full-extent fallback (caller checks the VMEM fit)


def _plan_tiles(R, L, itemsize, unit, tile_bytes, vmem_limit):
    """Pick (rb, cb) blocks for an (R, L) array; returns (rb, cb, fits_in_vmem)."""
    cb = _pick_block(L, 128, max(128, tile_bytes // (8 * itemsize)))
    rb = _pick_block(R, unit, max(unit, tile_bytes // (cb * itemsize)))
    # Guard the full-extent fallback: never let the double-buffered working set
    # (in + out + masks + headroom ~= 5 tiles) exceed the scoped-VMEM limit.
    if 5 * rb * cb * itemsize > vmem_limit:
        rb = _pick_block(R, unit, max(1, vmem_limit // (5 * cb * itemsize)))
    fits = 5 * rb * cb * itemsize <= vmem_limit
    return rb, cb, fits


# ----------------------------------------------------------------------------
# Pallas kernels + wrappers
# ----------------------------------------------------------------------------
def _fold_kernel(x_ref, cmask_ref, o_ref):
    # out[r, c] = x[r, c] * cmask[c]; 2-operand (no all-ones row-mask input).
    o_ref[...] = (x_ref[...] * cmask_ref[...]).astype(o_ref.dtype)


def _multiply_fold(x2, cmask, *, rb, cb, vmem_limit, donate=False):
    """x2: (R, L), cmask: (1, L) -> x2 * cmask."""
    R, L = x2.shape
    grid = (R // rb, L // cb)  # long row axis outermost (v7x megacore split)
    extra = dict(input_output_aliases={0: 0}) if donate else {}
    return pl.pallas_call(
        _fold_kernel,
        out_shape=jax.ShapeDtypeStruct((R, L), x2.dtype),
        grid=grid,
        in_specs=[
            pl.BlockSpec((rb, cb), lambda r, c: (r, c)),   # x tile
            pl.BlockSpec((1, cb), lambda r, c: (0, c)),    # per-lane mask
        ],
        out_specs=pl.BlockSpec((rb, cb), lambda r, c: (r, c)),
        compiler_params=pltpu.CompilerParams(
            dimension_semantics=("parallel", "parallel"),
            vmem_limit_bytes=vmem_limit,
        ),
        **extra,
    )(x2, cmask)


def _multiply_rowcol(x2, rmask, cmask, *, rb, cb, vmem_limit, donate=False):
    """x2: (R, L), rmask: (R, 1), cmask: (1, L) -> x2 * rmask * cmask."""
    R, L = x2.shape
    grid = (R // rb, L // cb)  # long row axis outermost (v7x megacore split)
    itemsize = jnp.dtype(x2.dtype).itemsize

    # Keep the whole row mask resident in VMEM (constant index_map, sliced in
    # kernel) when it is small and there is more than one row block; with a
    # single row block the per-block spec is already fetched exactly once.
    resident = (grid[0] > 1) and (R * itemsize <= (1 << 20))
    if resident:
        def kernel(x_ref, rmask_ref, cmask_ref, o_ref):
            r0 = pl.multiple_of(pl.program_id(0) * rb, rb)
            rm = rmask_ref[pl.ds(r0, rb), :]                       # (rb, 1)
            o_ref[...] = (x_ref[...] * rm * cmask_ref[...]).astype(o_ref.dtype)
        rmask_spec = pl.BlockSpec((R, 1), lambda r, c: (0, 0))     # resident
    else:
        def kernel(x_ref, rmask_ref, cmask_ref, o_ref):
            o_ref[...] = (x_ref[...] * rmask_ref[...] * cmask_ref[...]
                          ).astype(o_ref.dtype)
        rmask_spec = pl.BlockSpec((rb, 1), lambda r, c: (r, 0))

    extra = dict(input_output_aliases={0: 0}) if donate else {}
    return pl.pallas_call(
        kernel,
        out_shape=jax.ShapeDtypeStruct((R, L), x2.dtype),
        grid=grid,
        in_specs=[
            pl.BlockSpec((rb, cb), lambda r, c: (r, c)),   # x tile
            rmask_spec,                                    # per-row mask
            pl.BlockSpec((1, cb), lambda r, c: (0, c)),    # per-lane mask
        ],
        out_specs=pl.BlockSpec((rb, cb), lambda r, c: (r, c)),
        compiler_params=pltpu.CompilerParams(
            dimension_semantics=("parallel", "parallel"),
            vmem_limit_bytes=vmem_limit,
        ),
        **extra,
    )(x2, rmask, cmask)


def _apply_masks_pallas(x, time_mask, channel_mask, *, donate=False):
    """x: (B, T, C), time_mask: (T,), channel_mask: (C,) -> masked (B, T, C)."""
    B, T, C = x.shape
    dt = x.dtype
    itemsize = jnp.dtype(dt).itemsize
    unit = _sublane_unit(dt)
    tile_bytes, vmem_limit = _vmem_budget()

    if C % 128 != 0:
        # Fold C into the lane axis: stores stay full 128-lane width even for
        # small / ragged C, the combined time(x)channel mask is only T*C
        # elements (~1/B of the tensor traffic), and the kernel is 2-operand.
        R, L = B, T * C
        rb, cb, fits = _plan_tiles(R, L, itemsize, unit, tile_bytes, vmem_limit)
        if fits:
            x2 = x.reshape(R, L)
            cmask = (time_mask[:, None] * channel_mask[None, :]
                     ).astype(dt).reshape(1, L)
            out2 = _multiply_fold(x2, cmask, rb=rb, cb=cb,
                                  vmem_limit=vmem_limit, donate=donate)
            return out2.reshape(B, T, C)
        # else: T*C is both non-128-aligned and too large for a full-lane tile;
        # fall through to the (B*T, C) layout (partial-lane stores, but bounded
        # VMEM and no padded full-tensor copy).

    R, L = B * T, C
    rb, cb, _ = _plan_tiles(R, L, itemsize, unit, tile_bytes, vmem_limit)
    x2 = x.reshape(R, L)
    rmask = jnp.tile(time_mask.astype(dt), B).reshape(R, 1)
    cmask = channel_mask.astype(dt).reshape(1, L)
    out2 = _multiply_rowcol(x2, rmask, cmask, rb=rb, cb=cb,
                            vmem_limit=vmem_limit, donate=donate)
    return out2.reshape(B, T, C)


# ----------------------------------------------------------------------------
# Plain-JAX glue reproducing the PyTorch mask construction
# ----------------------------------------------------------------------------
def _expand_mask(mask_1d, mask_width):
    """Replicates EmbeddingMasker.expand_mask: every 0 at idx zeroes positions
    [idx, idx + mask_width). Equivalent to a backward-looking sliding-window
    min of width `mask_width` (single reduce_window, O(1) ops for any width)."""
    w = int(mask_width)
    if w <= 1:
        return mask_1d
    return lax.reduce_window(
        mask_1d,
        jnp.array(1.0, dtype=mask_1d.dtype),   # identity for min on {0, 1}
        lax.min,
        window_dimensions=(w,),
        window_strides=(1,),
        padding=((w - 1, 0),),
    )


class EmbeddingMasker:
    """JAX/Pallas port of the PyTorch EmbeddingMasker (training-mode forward).

    Only time_dim=1, embedding_dim=2 (the defaults) are supported, i.e. input
    layout (B, T, C)."""
    # TODO(synk): non-default time_dim / embedding_dim permutations are not implemented.

    def __init__(self, timestep_mask_prob, timestep_mask_width,
                 channel_mask_prob, channel_mask_width,
                 time_dim=1, embedding_dim=2):
        if not 0 <= channel_mask_prob <= 1:
            raise ValueError("channel_mask_prob must be in [0, 1]")
        if not 0 <= timestep_mask_prob <= 1:
            raise ValueError("timestep_mask_prob must be in [0, 1]")
        if time_dim == 0 or embedding_dim == 0:
            raise ValueError("dimensions to mask cannot be dim 0")
        assert time_dim == 1 and embedding_dim == 2, \
            "this port fixes the (B, T, C) layout"
        self.timestep_mask_prob = timestep_mask_prob
        self.timestep_mask_width = timestep_mask_width
        self.channel_mask_prob = channel_mask_prob
        self.channel_mask_width = channel_mask_width
        self.training = True

    def __call__(self, embedding_tensor, key, *, donate=False):
        """`donate=True` enables input_output_aliases={0: 0}; only beneficial
        when the caller actually donates the input buffer at the jit boundary
        (otherwise XLA inserts a defensive copy)."""
        if (not self.training
                or self.timestep_mask_prob + self.channel_mask_prob == 0):
            return embedding_tensor

        assert embedding_tensor.ndim == 3
        _, T, C = embedding_tensor.shape
        k_time, k_chan = jax.random.split(key)

        # NOTE: the reference PyTorch code gates *both* mask draws on
        # timestep_mask_prob > 0 (its literal behavior is reproduced here):
        # with timestep_mask_prob == 0 no masking is applied at all.
        if self.timestep_mask_prob <= 0:
            return embedding_tensor

        u_t = jax.random.uniform(k_time, (T,))
        time_mask = jnp.where(u_t <= self.timestep_mask_prob, 0.0, 1.0)
        time_mask = _expand_mask(time_mask, self.timestep_mask_width)

        u_c = jax.random.uniform(k_chan, (C,))
        channel_mask = jnp.where(u_c <= self.channel_mask_prob, 0.0, 1.0)
        channel_mask = _expand_mask(channel_mask, self.channel_mask_width)

        return _apply_masks_pallas(embedding_tensor, time_mask, channel_mask,
                                   donate=donate)


# ----------------------------------------------------------------------------
# Demo / self-test
# ----------------------------------------------------------------------------
if __name__ == "__main__":
    root = jax.random.PRNGKey(0)
    k_x1, k_m1, k_x2, k_m2, k_x3, k_x4, k_m4 = jax.random.split(root, 7)

    masker = EmbeddingMasker(
        timestep_mask_prob=0.3, timestep_mask_width=2,
        channel_mask_prob=0.2, channel_mask_width=3,
    )

    def reference(x, key, tp, tw, cp, cw):
        T, C = x.shape[1], x.shape[2]
        kt, kc = jax.random.split(key)
        tm = _expand_mask(jnp.where(jax.random.uniform(kt, (T,)) <= tp, 0.0, 1.0), tw)
        cm = _expand_mask(jnp.where(jax.random.uniform(kc, (C,)) <= cp, 0.0, 1.0), cw)
        out = x.astype(jnp.float32) * tm[None, :, None] * cm[None, None, :]
        return out.astype(x.dtype)

    # 1) fold path (C % 128 != 0): (B, T, C) = (2, 8, 32)
    x1 = jax.random.normal(k_x1, (2, 8, 32), jnp.float32)
    o1 = jax.block_until_ready(masker(x1, k_m1))
    assert o1.shape == x1.shape and o1.dtype == x1.dtype
    assert jnp.allclose(o1, reference(x1, k_m1, 0.3, 2, 0.2, 3), atol=1e-6)

    # 2) lane-dense path (C % 128 == 0): (B, T, C) = (2, 16, 128)
    x2 = jax.random.normal(k_x2, (2, 16, 128), jnp.float32)
    o2 = jax.block_until_ready(masker(x2, k_m2))
    assert jnp.allclose(o2, reference(x2, k_m2, 0.3, 2, 0.2, 3), atol=1e-6)

    # 3) resident-row-mask kernel variant (multiple row blocks), exercised directly
    x3 = jax.random.normal(k_x3, (32, 128), jnp.float32)
    rm3 = jnp.where(jnp.arange(32) % 3 == 0, 0.0, 1.0).reshape(32, 1)
    cm3 = jnp.where(jnp.arange(128) % 5 == 0, 0.0, 1.0).reshape(1, 128)
    _, vlim = _vmem_budget()
    o3 = jax.block_until_ready(
        _multiply_rowcol(x3, rm3, cm3, rb=8, cb=128, vmem_limit=vlim))
    assert jnp.allclose(o3, x3 * rm3 * cm3, atol=1e-6)

    # 4) bf16 fold path (dtype-aware sublane unit)
    x4 = jax.random.normal(k_x4, (2, 8, 32), jnp.float32).astype(jnp.bfloat16)
    o4 = jax.block_until_ready(masker(x4, k_m4))
    assert o4.dtype == jnp.bfloat16
    assert jnp.allclose(o4.astype(jnp.float32),
                        reference(x4, k_m4, 0.3, 2, 0.2, 3).astype(jnp.float32),
                        atol=1e-6)

    print("KERNEL_OK")
</pallas_src>

<mosaic_0001>
module attributes {stable_mosaic.version = 11 : i64} {
  func.func @_fold_kernel(%arg0: i32, %arg1: i32, %arg2: memref<2x256xf32, #tpu.memory_space<vmem>>, %arg3: memref<1x256xf32, #tpu.memory_space<vmem>>, %arg4: memref<2x256xf32, #tpu.memory_space<vmem>>) attributes {dimension_semantics = [#tpu.dimension_semantics<parallel>, #tpu.dimension_semantics<parallel>], iteration_bounds = array<i64: 1, 1>, scalar_prefetch = 0 : i64, scratch_operands = 0 : i64, tpu.core_type = #tpu.core_type<tc>, window_params = [{transform_indices = @transform_0, window_bounds = array<i64: 2, 256>}, {transform_indices = @transform_1, window_bounds = array<i64: 1, 256>}, {transform_indices = @transform_2, window_bounds = array<i64: 2, 256>}]} {
    %c0 = arith.constant 0 : index
    %c0_0 = arith.constant 0 : index
    %0 = vector.load %arg2[%c0, %c0_0] : memref<2x256xf32, #tpu.memory_space<vmem>>, vector<2x256xf32>
    %c0_1 = arith.constant 0 : index
    %c0_2 = arith.constant 0 : index
    %1 = vector.load %arg3[%c0_1, %c0_2] : memref<1x256xf32, #tpu.memory_space<vmem>>, vector<1x256xf32>
    %2 = vector.broadcast %1 : vector<1x256xf32> to vector<2x256xf32>
    %3 = arith.mulf %0, %2 : vector<2x256xf32>
    %c0_3 = arith.constant 0 : index
    %c0_4 = arith.constant 0 : index
    %4 = vector.load %arg4[%c0_3, %c0_4] : memref<2x256xf32, #tpu.memory_space<vmem>>, vector<2x256xf32>
    tpu.vector_store %arg4[%c0_3, %c0_4], %3 {strides = array<i32>} : memref<2x256xf32, #tpu.memory_space<vmem>>, vector<2x256xf32>,
    return
  }
  func.func @transform_0(%arg0: i32, %arg1: i32) -> (i32, i32) {
    %c0_i32 = arith.constant 0 : i32
    return %arg0, %arg1 : i32, i32
  }
  func.func @transform_1(%arg0: i32, %arg1: i32) -> (i32, i32) {
    %c0_i32 = arith.constant 0 : i32
    %c0_i32_0 = arith.constant 0 : i32
    return %c0_i32, %arg1 : i32, i32
  }
  func.func @transform_2(%arg0: i32, %arg1: i32) -> (i32, i32) {
    %c0_i32 = arith.constant 0 : i32
    return %arg0, %arg1 : i32, i32
  }
}

</mosaic_0001>

<bundles_post_ra>
// kernel: tpu_custom_call.1
= control target key start
LH: loop header
LB: loop body
LE: loop exit
PB: predicated region body
PF: predicated region fallthrough
CT: control target
= control target key end

     0   :  { %7 = vsyncpa [#allocation3], 0  ;;  %s172_s0 = inlined_call_operand.hbm [shape: f32[2,256], index: 0, kind: input, shape index: {}]   ;;  %s173_s1 = inlined_call_operand.hbm [shape: f32[1,256], index: 1, kind: input, shape index: {}]   ;;  %s174_s2 = inlined_call_operand.hbm [shape: f32[2,256], index: 2, kind: output, shape index: {}]  }
   0x1   :  { %8 = vsyncpa [#allocation6], 0 }
   0x2   :  { %9 = vsyncpa [#allocation4], 0  ;;  %s144_s9 = smov [#allocation2]   ;;  %s145_s11 = smov [#allocation5]  }
   0x3   :  { %s16_s10 = sshll.u32 %s144_s9, 4  ;;  %s26_s12 = sshll.u32 %s145_s11, 4  ;;  %s17_s10 = int_to_ptr.vmem [resolvable:$true] %s16_s10  ;;  %s27_s12 = int_to_ptr.vmem [resolvable:$true] %s26_s12 }
   0x4   :  { %s86_s13 = scalar_lea.vmem %s17_s10, 64  ;;  %p91_p1 = scmp.lt.s32.totalorder %s17_s10, %s17_s10 }
   0x5   :  { %p87_p0 = scmp.ne.s32.totalorder %s17_s10, %s86_s13  ;;  %p92_p2 = scmp.lt.s32.totalorder %s86_s13, %s86_s13 }
   0x7   :  { %p93_p3 = por %p92_p2, %p91_p1 }
   0x9   :  { %p94_p4 = pnand %p93_p3, %p87_p0 }
   0xb   :  { %97 = shalt.err (!%p94_p4)
}
   0xc   :  { %19 = dma.hbm_to_vmem [thread:$0]  %s172_s0, 64, %s17_s10, [#allocation3]  }
   0xd   :  { %s106_s16 = scalar_lea.vmem %s27_s12, 32  ;;  %p111_p6 = scmp.lt.s32.totalorder %s27_s12, %s27_s12 }
   0xe   :  { %p107_p5 = scmp.ne.s32.totalorder %s27_s12, %s106_s16  ;;  %p112_p7 = scmp.lt.s32.totalorder %s106_s16, %s106_s16 }
  0x10   :  { %p113_p8 = por %p112_p7, %p111_p6 }
  0x12   :  { %p114_p9 = pnand %p113_p8, %p107_p5 }
  0x14   :  { %117 = shalt.err (!%p114_p9)
}
  0x15   :  { %29 = dma.hbm_to_vmem [thread:$0]  %s173_s1, 32, %s27_s12, [#allocation6]  }
  0x16   :  { %138 = dma.done.wait [#allocation3], 64  }
  0x17   :  { %139 = vsyncadd [#allocation3], 4294967232 }
  0x18   :  { %140 = dma.done.wait [#allocation6], 32  }
  0x19   :  { %141 = vsyncadd [#allocation6], 4294967264  ;;  %v39_v0 = vlaneseq  ;;  %v146_v1 = vmov 1983009808   ;;  %v37_v7 = vld [vmem:[#allocation5] sm:$0x3] }
  0x1a   :  { %v49_v2 = vunpack.c.l.s4 %v146_v1  ;;  %v36_v12 = vld [vmem:[#allocation2] sm:$0xf]  ;;  %s147_s0 = smov [#allocation7]  }
  0x1b   :  { %v40_v3 = vshrl.u32 %v39_v0, 7  ;;  %s64_s19 = sshll.u32 %s147_s0, 4  ;;  %s65_s19 = int_to_ptr.vmem [resolvable:$true] %s64_s19 }
  0x1c   :  { %v50_v6 = vunpack.c.0.s8 %v49_v2  ;;  %s118_s1 = scalar_lea.vmem %s65_s19, 64  ;;  %p123_p11 = scmp.lt.s32.totalorder %s65_s19, %s65_s19 }
  0x1d   :  { %v41_v4 = vsub.s32 0, %v40_v3  ;;  %v45_v5 = vsub.s32 1, %v40_v3  ;;  %p119_p10 = scmp.ne.s32.totalorder %s65_s19, %s118_s1  ;;  %p124_p12 = scmp.lt.s32.totalorder %s118_s1, %s118_s1 }
  0x1e   :  { %v53_v10 = vsub.s32 %v50_v6, %v40_v3 }
  0x1f   :  { %v42_v8 = vrot.slane %v37_v7, %v41_v4  ;;  %v46_v9 = vrot.slane %v37_v7, %v45_v5  ;;  %p125_p13 = por %p124_p12, %p123_p11 }
  0x21   :  { %v47_v11 = vcombine.low %v42_v8, %v46_v9  ;;  %p126_p0 = pnand %p125_p13, %p119_p10 }
  0x23   :  { %v54_v13 = vrot.slane %v47_v11, %v53_v10 }
  0x25   :  { %v56_v14 = vmul.f32 %v54_v13, %v36_v12 }
  0x27   :  { %57 = vst [vmem:[#allocation7] sm:$0xf] %v56_v14 }
  0x28   :  { %129 = shalt.err (!%p126_p0)
}
  0x29   :  { %67 = dma.vmem_to_hbm [thread:$0]  %s65_s19, 64, %s174_s2, [#allocation4]  }
  0x2a   :  { %142 = dma.done.wait [#allocation4], 64  }
  0x2b   :  { %143 = vsyncadd [#allocation4], 4294967232 }
  0x2c   :  { %71 = vsyncpa [#allocation3], 1 }
  0x2d   :  { %72 = vsyncpa [#allocation6], 1 }
  0x2e   :  { %73 = vsyncpa [#allocation4], 1 }

</bundles_post_ra>
